<compile_context>
chip_gen: v5e
topology: v5e:2x2
jax: 0.10.0
libtpu: 0.0.40
codegen_flags: <defaults>
</compile_context>

<pallas_src>
import jax
import jax.numpy as jnp
from jax.experimental import pallas as pl
from jax.experimental.pallas import tpu as pltpu


def _round_up(n: int, m: int) -> int:
    return ((n + m - 1) // m) * m


def _make_logreg_kernel(f_total: int, tile_k: int, mask_ragged_k: bool):
    def kernel(x_ref, w_ref, b_ref, o_ref, acc_ref):
        # x_ref : (tile_b, tile_k) VMEM, streamed           (native dtype)
        # w_ref : (1, tile_k)      VMEM, revisited/resident (native dtype)
        # b_ref : (1, 1)           SMEM scalar bias (f32)
        # o_ref : (1, tile_b)      lane-dense output block
        # acc   : (1, tile_b)      f32 accumulator scratch
        k = pl.program_id(1)

        @pl.when(k == 0)
        def _init():
            acc_ref[...] = jnp.zeros_like(acc_ref)

        x_t = x_ref[...]
        w_t = w_ref[...]
        if mask_ragged_k:
            # Last K block may extend past F: zero the garbage feature columns of
            # BOTH operands so stale VMEM (possibly inf/nan) cannot pollute acc.
            rem = f_total - k * tile_k
            xlane = jax.lax.broadcasted_iota(jnp.int32, x_t.shape, 1)
            x_t = jnp.where(xlane < rem, x_t, jnp.zeros_like(x_t))
            wlane = jax.lax.broadcasted_iota(jnp.int32, w_t.shape, 1)
            w_t = jnp.where(wlane < rem, w_t, jnp.zeros_like(w_t))

        # (1, K) x (tile_b, K) contracting both on K -> (1, tile_b).
        # rhs-contracted matmul is handled natively by Mosaic (flash-attn pattern):
        # no materialized transpose of the large x tile.
        acc_ref[...] += jax.lax.dot_general(
            w_t, x_t,
            dimension_numbers=(((1,), (1,)), ((), ())),
            preferred_element_type=jnp.float32,
        )

        @pl.when(k == pl.num_programs(1) - 1)
        def _finalize():
            z = acc_ref[...] + b_ref[0, 0]
            # sigmoid via EUP exp + EUP approx reciprocal.
            y = pl.reciprocal(1.0 + jnp.exp(-z), approx=True)
            o_ref[...] = y.astype(o_ref.dtype)

    return kernel


def logistic_regression(x, weight, bias, *, tile_b=None, tile_k=None,
                        x_tile_bytes=4 * 1024 * 1024):
    """sigmoid(x @ weight.T + bias).  x: (B, F), weight: (1, F), bias: (1,) -> (B, 1)."""
    B, F = x.shape

    # Stream x in its native dtype (bf16 stays bf16 -> half the HBM bytes).
    if x.dtype not in (jnp.float32, jnp.bfloat16):
        x = x.astype(jnp.float32)
    dtype = x.dtype
    itemsize = jnp.dtype(dtype).itemsize
    w = weight.reshape(1, F).astype(dtype)
    b = jnp.asarray(bias, dtype=jnp.float32).reshape(1, 1)

    # ---- Tile sizing: by bytes, not rows --------------------------------------
    if tile_k is None:
        if 128 * F * itemsize <= x_tile_bytes:
            tile_k = F                                    # one K step, whole feature dim
        else:                                             # very wide F: K-tiled reduction
            tile_k = max(128, ((x_tile_bytes // (128 * itemsize)) // 128) * 128)
    tile_k = int(min(tile_k, F))
    if tile_k != F:
        tile_k = max(128, (tile_k // 128) * 128)          # lane-aligned K blocks

    if tile_b is None:
        rows = x_tile_bytes // max(tile_k * itemsize, 1)
        tile_b = min(16384, max(128, (rows // 128) * 128))
    else:
        tile_b = max(128, _round_up(int(tile_b), 128))
    tile_b = int(min(tile_b, _round_up(B, 128)))          # don't over-tile tiny batches

    num_b = -(-B // tile_b)
    num_k = -(-F // tile_k)
    padded_b = num_b * tile_b
    mask_ragged_k = (num_k > 1) and (F % tile_k != 0)

    kernel = _make_logreg_kernel(F, tile_k, mask_ragged_k)

    out = pl.pallas_call(
        kernel,
        out_shape=jax.ShapeDtypeStruct((1, padded_b), dtype),
        grid_spec=pltpu.PrefetchScalarGridSpec(
            num_scalar_prefetch=0,
            grid=(num_b, num_k),                          # batch outer, K reduction inner
            in_specs=[
                # x: streamed tiles, no host padding (Pallas clips ragged blocks).
                pl.BlockSpec((tile_b, tile_k), lambda i, k: (i, k)),
                # w: tiny revisited block -> effectively VMEM-resident.
                pl.BlockSpec((1, tile_k), lambda i, k: (0, k)),
                # bias: scalar in SMEM.
                pl.BlockSpec(memory_space=pltpu.MemorySpace.SMEM),
            ],
            # Lane-dense output: one (1, tile_b) row block per batch tile.
            out_specs=pl.BlockSpec((1, tile_b), lambda i, k: (0, i)),
            scratch_shapes=[pltpu.VMEM((1, tile_b), jnp.float32)],
        ),
        compiler_params=pltpu.CompilerParams(
            dimension_semantics=("parallel", "arbitrary"),
        ),
        cost_estimate=pl.CostEstimate(
            flops=2 * B * F,
            transcendentals=2 * B,
            bytes_accessed=B * F * itemsize + F * itemsize + padded_b * itemsize + 4,
        ),
    )(x, w, b)

    # (1, padded_b) flattens in batch order; drop the ragged tail -> (B, 1).
    return out.reshape(padded_b, 1)[:B]


if __name__ == "__main__":
    key = jax.random.PRNGKey(0)
    kx, kw, kb = jax.random.split(key, 3)

    # Small shapes; batch intentionally NOT a multiple of the 128-row tile.
    B, F = 37, 32
    bound = 1.0 / (F ** 0.5)
    x = jax.random.normal(kx, (B, F), dtype=jnp.float32)
    weight = jax.random.uniform(kw, (1, F), minval=-bound, maxval=bound,
                                dtype=jnp.float32)
    bias = jax.random.uniform(kb, (1,), minval=-bound, maxval=bound,
                              dtype=jnp.float32)

    y = logistic_regression(x, weight, bias)
    jax.block_until_ready(y)

    y_ref = jax.nn.sigmoid(x @ weight.T + bias)
    assert y.shape == (B, 1), y.shape
    assert jnp.allclose(y, y_ref, atol=5e-3, rtol=5e-3), \
        float(jnp.max(jnp.abs(y - y_ref)))

    # Also exercise the K-tiled path with a ragged last feature block.
    F2 = 300
    x2 = jax.random.normal(kx, (B, F2), dtype=jnp.float32)
    w2 = jax.random.uniform(kw, (1, F2), minval=-bound, maxval=bound,
                            dtype=jnp.float32)
    y2 = logistic_regression(x2, w2, bias, tile_b=128, tile_k=128)
    jax.block_until_ready(y2)
    y2_ref = jax.nn.sigmoid(x2 @ w2.T + bias)
    assert jnp.allclose(y2, y2_ref, atol=5e-3, rtol=5e-3), \
        float(jnp.max(jnp.abs(y2 - y2_ref)))

    print("KERNEL_OK")
</pallas_src>

<mosaic_0001>
module attributes {stable_mosaic.version = 11 : i64} {
  func.func @kernel(%arg0: i32, %arg1: i32, %arg2: memref<128x32xf32, #tpu.memory_space<vmem>>, %arg3: memref<1x32xf32, #tpu.memory_space<vmem>>, %arg4: memref<1x1xf32, #tpu.memory_space<smem>>, %arg5: memref<1x128xf32, #tpu.memory_space<vmem>>, %arg6: memref<1x128xf32, #tpu.memory_space<vmem>>) attributes {dimension_semantics = [#tpu.dimension_semantics<parallel>, #tpu.dimension_semantics<arbitrary>], iteration_bounds = array<i64: 1, 1>, scalar_prefetch = 0 : i64, scratch_operands = 1 : i64, tpu.core_type = #tpu.core_type<tc>, window_params = [{transform_indices = @transform_0, window_bounds = array<i64: 128, 32>}, {transform_indices = @transform_1, window_bounds = array<i64: 1, 32>}, {transform_indices = @transform_2, window_bounds = array<i64: 1, 1>}, {transform_indices = @transform_3, window_bounds = array<i64: 1, 128>}]} {
    %c0_i32 = arith.constant 0 : i32
    %0 = arith.cmpi eq, %arg1, %c0_i32 : i32
    %1 = arith.extui %0 : i1 to i32
    %c0_i32_0 = arith.constant 0 : i32
    %2 = arith.cmpi ne, %1, %c0_i32_0 : i32
    scf.if %2 {
      %cst_10 = arith.constant 0.000000e+00 : f32
      %12 = vector.broadcast %cst_10 : f32 to vector<1x128xf32>
      %c0_11 = arith.constant 0 : index
      %c0_12 = arith.constant 0 : index
      %13 = vector.load %arg6[%c0_11, %c0_12] : memref<1x128xf32, #tpu.memory_space<vmem>>, vector<1x128xf32>
      tpu.vector_store %arg6[%c0_11, %c0_12], %12 {strides = array<i32>} : memref<1x128xf32, #tpu.memory_space<vmem>>, vector<1x128xf32>,
    } else {
    }
    %c0 = arith.constant 0 : index
    %c0_1 = arith.constant 0 : index
    %3 = vector.load %arg2[%c0, %c0_1] : memref<128x32xf32, #tpu.memory_space<vmem>>, vector<128x32xf32>
    %c0_2 = arith.constant 0 : index
    %c0_3 = arith.constant 0 : index
    %4 = vector.load %arg3[%c0_2, %c0_3] : memref<1x32xf32, #tpu.memory_space<vmem>>, vector<1x32xf32>
    %c0_4 = arith.constant 0 : index
    %c0_5 = arith.constant 0 : index
    %5 = vector.load %arg6[%c0_4, %c0_5] : memref<1x128xf32, #tpu.memory_space<vmem>>, vector<1x128xf32>
    %cst = arith.constant dense<0.000000e+00> : vector<1x128xf32>
    %6 = tpu.matmul %4, %3, %cst {dimension_numbers = #tpu.dot_dimension_numbers<[1], [1], [0], [0], [0, 0, 1, 0], [], []>} : vector<1x32xf32>, vector<128x32xf32>, vector<1x128xf32> -> vector<1x128xf32>
    %7 = arith.addf %5, %6 : vector<1x128xf32>
    %c0_6 = arith.constant 0 : index
    %c0_7 = arith.constant 0 : index
    %8 = vector.load %arg6[%c0_6, %c0_7] : memref<1x128xf32, #tpu.memory_space<vmem>>, vector<1x128xf32>
    tpu.vector_store %arg6[%c0_6, %c0_7], %7 {strides = array<i32>} : memref<1x128xf32, #tpu.memory_space<vmem>>, vector<1x128xf32>,
    %c0_i32_8 = arith.constant 0 : i32
    %9 = arith.cmpi eq, %arg1, %c0_i32_8 : i32
    %10 = arith.extui %9 : i1 to i32
    %c0_i32_9 = arith.constant 0 : i32
    %11 = arith.cmpi ne, %10, %c0_i32_9 : i32
    scf.if %11 {
      %c0_10 = arith.constant 0 : index
      %c0_11 = arith.constant 0 : index
      %12 = vector.load %arg6[%c0_10, %c0_11] : memref<1x128xf32, #tpu.memory_space<vmem>>, vector<1x128xf32>
      %c0_12 = arith.constant 0 : index
      %c0_13 = arith.constant 0 : index
      %13 = memref.load %arg4[%c0_12, %c0_13] : memref<1x1xf32, #tpu.memory_space<smem>>
      %14 = vector.broadcast %13 : f32 to vector<1x128xf32>
      %15 = arith.addf %12, %14 : vector<1x128xf32>
      %cst_14 = arith.constant 0.000000e+00 : f32
      %16 = vector.broadcast %cst_14 : f32 to vector<1x128xf32>
      %17 = arith.subf %16, %15 : vector<1x128xf32>
      %18 = math.exp %17 : vector<1x128xf32>
      %cst_15 = arith.constant 1.000000e+00 : f32
      %19 = vector.broadcast %cst_15 : f32 to vector<1x128xf32>
      %20 = arith.addf %19, %18 : vector<1x128xf32>
      %21 = tpu.reciprocal %20 {approx = true} : vector<1x128xf32> -> vector<1x128xf32>
      %c0_16 = arith.constant 0 : index
      %c0_17 = arith.constant 0 : index
      %22 = vector.load %arg5[%c0_16, %c0_17] : memref<1x128xf32, #tpu.memory_space<vmem>>, vector<1x128xf32>
      tpu.vector_store %arg5[%c0_16, %c0_17], %21 {strides = array<i32>} : memref<1x128xf32, #tpu.memory_space<vmem>>, vector<1x128xf32>,
    } else {
    }
    return
  }
  func.func @transform_0(%arg0: i32, %arg1: i32) -> (i32, i32) {
    %c0_i32 = arith.constant 0 : i32
    return %arg0, %arg1 : i32, i32
  }
  func.func @transform_1(%arg0: i32, %arg1: i32) -> (i32, i32) {
    %c0_i32 = arith.constant 0 : i32
    %c0_i32_0 = arith.constant 0 : i32
    return %c0_i32, %arg1 : i32, i32
  }
  func.func @transform_2(%arg0: i32, %arg1: i32) -> (i32, i32) {
    %c0_i32 = arith.constant 0 : i32
    %c0_i32_0 = arith.constant 0 : i32
    %c0_i32_1 = arith.constant 0 : i32
    return %c0_i32, %c0_i32_0 : i32, i32
  }
  func.func @transform_3(%arg0: i32, %arg1: i32) -> (i32, i32) {
    %c0_i32 = arith.constant 0 : i32
    %c0_i32_0 = arith.constant 0 : i32
    return %c0_i32, %arg0 : i32, i32
  }
}

</mosaic_0001>

<bundles_post_ra>
// kernel: tpu_custom_call.1
= control target key start
LH: loop header
LB: loop body
LE: loop exit
PB: predicated region body
PF: predicated region fallthrough
CT: control target
= control target key end

     0   :  { %vm39_vm0 = vcmask 261120   ;;  %s287_s0 = inlined_call_operand.vmem [shape: f32[37,32], index: 0, kind: input, shape index: {}]   ;;  %s288_s1 = inlined_call_operand.vmem [shape: f32[1,32], index: 1, kind: input, shape index: {}]   ;;  %s289_s2 = inlined_call_operand.<no memory space> [shape: f32[1,1], index: 2, kind: input, shape index: {}]   ;;  %s290_s3 = inlined_call_operand.hbm [shape: f32[1,128], index: 3, kind: output, shape index: {}]  }
   0x1   :  { %v36_v0 = vld [vmem:[%s287_s0 + $0x78] sm:$0xff]  ;;  %v35_v1 = vld [vmem:[%s287_s0 + $0x70] sm:$0xff] }
   0x2   :  { %142 = vmatpush.xpose.msk.msra.mxu0 %vm39_vm0, %v36_v0 }
   0x3   :  { %9 = vsyncpa [#allocation5], 0  ;;  %v34_v2 = vld [vmem:[%s287_s0 + $0x68] sm:$0xff]  ;;  %v33_v3 = vld [vmem:[%s287_s0 + $0x60] sm:$0xff]  ;;  %v191_v9 = vmov 0.0   ;;  %v118_v21 = vstv %s289_s2  ;;  %s133_s23 = sshll.u32 %s290_s3, 4  ;;  %s134_s23 = int_to_ptr.hbm [resolvable:$true] %s133_s23 }
   0x4   :  { %v32_v4 = vld [vmem:[%s287_s0 + $0x58] sm:$0xff]  ;;  %v31_v5 = vld [vmem:[%s287_s0 + $0x50] sm:$0xff]  ;;  %v30_v6 = vld [vmem:[%s287_s0 + $0x48] sm:$0xff]  ;;  %20 = vst [vmem:[#allocation2] sm:$0x1] %v191_v9 }
   0x5   :  { %v29_v7 = vld [vmem:[%s287_s0 + $0x40] sm:$0xff]  ;;  %v28_v8 = vld [vmem:[%s287_s0 + $0x38] sm:$0xff]  ;;  %v27_v10 = vld [vmem:[%s287_s0 + $0x30] sm:$0xff] }
   0x6   :  { %143 = vmatpush.xpose.msk.msra.mxu0 %vm39_vm0, %v35_v1  ;;  %v26_v11 = vld [vmem:[%s287_s0 + $0x28] sm:$0xff]  ;;  %v25_v12 = vld [vmem:[%s287_s0 + $0x20] sm:$0xff]  ;;  %v24_v13 = vld [vmem:[%s287_s0 + $0x18] sm:$0xff] }
   0x7   :  { %v23_v14 = vld [vmem:[%s287_s0 + $0x10] sm:$0xff]  ;;  %v22_v15 = vld [vmem:[%s287_s0 + $0x8] sm:$0xff]  ;;  %v21_v16 = vld [vmem:[%s287_s0] sm:$0xff]  ;;  %s192_s0 = smov [#allocation4]  }
   0x8   :  { %v37_v17 = vld [vmem:[%s288_s1] sm:$0x1]  ;;  %s131_s1 = sshll.u32 %s192_s0, 4  ;;  %s132_s1 = int_to_ptr.vmem [resolvable:$true] %s131_s1 }
   0xa   :  { %144 = vmatpush.xpose.msk.msra.mxu0 %vm39_vm0, %v34_v2 }
   0xb   :  { %v38_v18 = vld [vmem:[#allocation2] sm:$0x1] }
   0xe   :  { %145 = vmatpush.xpose.msk.msra.mxu0 %vm39_vm0, %v33_v3 }
  0x12   :  { %146 = vmatpush.xpose.msk.msra.mxu0 %vm39_vm0, %v32_v4 }
  0x16   :  { %147 = vmatpush.xpose.msk.msra.mxu0 %vm39_vm0, %v31_v5 }
  0x1a   :  { %148 = vmatpush.xpose.msk.msra.mxu0 %vm39_vm0, %v30_v6 }
  0x1e   :  { %149 = vmatpush.xpose.msk.msra.mxu0 %vm39_vm0, %v29_v7 }
  0x22   :  { %150 = vmatpush.xpose.msk.msra.mxu0 %vm39_vm0, %v28_v8 }
  0x26   :  { %151 = vmatpush.xpose.msk.msra.mxu0 %vm39_vm0, %v27_v10 }
  0x2a   :  { %152 = vmatpush.xpose.msk.msra.mxu0 %vm39_vm0, %v26_v11 }
  0x2e   :  { %153 = vmatpush.xpose.msk.msra.mxu0 %vm39_vm0, %v25_v12 }
  0x32   :  { %154 = vmatpush.xpose.msk.msra.mxu0 %vm39_vm0, %v24_v13 }
  0x36   :  { %155 = vmatpush.xpose.msk.msra.mxu0 %vm39_vm0, %v23_v14 }
  0x3a   :  { %156 = vmatpush.xpose.msk.msra.mxu0 %vm39_vm0, %v22_v15 }
  0x3e   :  { %157 = vmatpush.xpose.msk.msra.mxu0 %vm39_vm0, %v21_v16 }
  0x41   :  { %158 = vmatmul.msk.f32.vlgmr.msra.gmra.mxu0 %vm39_vm0, %v37_v17 }
  0xbe   :  { %v108_v19 = vpop.f32.mrf.mxu0 }
  0xbf   :  { %v111_v20 = vadd.f32 %v108_v19, %v38_v18 }
  0xc1   :  { %112 = vst [vmem:[#allocation2] sm:$0x1] %v111_v20 }
  0xc8   :  { %v116_v22 = vld [vmem:[#allocation2] sm:$0x1] }
  0xc9   :  { %v119_v23 = vadd.f32 %v118_v21, %v116_v22 }
  0xcb   :  { %v120_v24 = vsub.f32 0.0, %v119_v23 }
  0xcd   :  { %v121_v25 = vmul.f32 1.442695, %v120_v24 }
  0xcf   :  { %161 = vpow2.f32 %v121_v25 }
  0xd5   :  { %v162_v26 = vpop.eup %161 }
  0xd6   :  { %v123_v27 = vadd.f32 1.0, %v162_v26 }
  0xd8   :  { %163 = vrcp.f32 %v123_v27 }
  0xde   :  { %v164_v28 = vpop.eup %163 }
  0xdf   :  { %125 = vst [vmem:[#allocation4] sm:$0x1] %v164_v28 }
  0xe0   :  { %136 = dma.vmem_to_hbm [thread:$0]  %s132_s1, 16, %s134_s23, [#allocation5]  }
  0xe1   :  { %189 = dma.done.wait [#allocation5], 16  }
  0xe2   :  { %190 = vsyncadd [#allocation5], 4294967280 }
  0xe3   :  { %141 = vsyncpa [#allocation5], 1 }

</bundles_post_ra>
